<compile_context>
chip_gen: v7x
topology: tpu7x:2x2x1
jax: 0.10.0
libtpu: 0.0.40
codegen_flags: <defaults>
</compile_context>

<pallas_src>
import functools

import jax
import jax.numpy as jnp
from jax.experimental import pallas as pl
from jax.experimental.pallas import tpu as pltpu


def _predictor_kernel(x_ref, w_ref, b_ref, cls_ref, box_ref, *, cls_pad):
    # f32 x tile arrives untouched from HBM; cast to the compute dtype in VMEM,
    # do one fused MXU matmul with f32 accumulation, add the f32 bias, then
    # store the two heads to their own lane-dense, lane-aligned output slabs.
    x = x_ref[...].astype(w_ref.dtype)
    acc = jnp.dot(x, w_ref[...], preferred_element_type=jnp.float32)
    acc = acc + b_ref[...]
    cls_ref[...] = acc[:, :cls_pad].astype(cls_ref.dtype)
    box_ref[...] = acc[:, cls_pad:].astype(box_ref.dtype)


def _round_up(v, m):
    return pl.cdiv(v, m) * m


def _resident_spec(block_shape):
    # Constant-index resident operand: request a single pipeline buffer if the
    # installed Pallas exposes pipeline_mode; otherwise use the default spec.
    try:
        return pl.BlockSpec(block_shape, lambda i: (0, 0),
                            pipeline_mode=pl.Buffered(1))
    except (AttributeError, TypeError):
        return pl.BlockSpec(block_shape, lambda i: (0, 0))


def prepare_params(w_cls, b_cls, w_bbox, b_bbox, compute_dtype=jnp.bfloat16):
    """One-time parameter prep (model load, not the per-call hot path).

    Transposes both Linear weights, pads EACH head's output width to a
    128-lane boundary (so downstream slices are lane-aligned), fuses them along
    the output axis, and casts to the MXU-native compute dtype.

    w_cls:  (num_classes, C)      b_cls:  (num_classes,)
    w_bbox: (num_classes*4, C)    b_bbox: (num_classes*4,)
    Returns (w_fused (C, cls_pad+box_pad), b_fused (1, cls_pad+box_pad) f32,
             num_cls, num_box, cls_pad, box_pad).
    """
    num_cls, c = w_cls.shape
    num_box = w_bbox.shape[0]
    cls_pad = pl.cdiv(num_cls, 128) * 128
    box_pad = pl.cdiv(num_box, 128) * 128

    wc = jnp.pad(w_cls.T, ((0, 0), (0, cls_pad - num_cls)))       # (C, cls_pad)
    wb = jnp.pad(w_bbox.T, ((0, 0), (0, box_pad - num_box)))      # (C, box_pad)
    w_fused = jnp.concatenate([wc, wb], axis=1).astype(compute_dtype)

    bc = jnp.pad(b_cls, (0, cls_pad - num_cls))
    bb = jnp.pad(b_bbox, (0, box_pad - num_box))
    b_fused = jnp.concatenate([bc, bb]).reshape(1, -1).astype(jnp.float32)
    return w_fused, b_fused, num_cls, num_box, cls_pad, box_pad


def fast_rcnn_predictor(x, w_fused, b_fused, num_cls, num_box, cls_pad, box_pad,
                        *, tile_n=1024, min_pallas_rows=64,
                        vmem_budget_bytes=24 * 2 ** 20):
    """Pallas implementation of FastRCNNPredictor.forward.

    x: (N, C) or (N, C, 1, 1) float32; other args from prepare_params().
    Returns (scores (N, num_cls) f32, bbox_deltas (N, num_box) f32).
    """
    if x.ndim == 4:
        assert x.shape[2:] == (1, 1), "expected 1x1 spatial dims"
    x2d = x.reshape(x.shape[0], -1)                    # flatten(start_dim=1)
    n, c = x2d.shape
    out_pad = cls_pad + box_pad
    compute_dtype = w_fused.dtype

    # Degenerate-N fallback: pallas_call is pure launch/DMA overhead here.
    if n < min_pallas_rows:
        acc = jnp.dot(x2d.astype(compute_dtype), w_fused,
                      preferred_element_type=jnp.float32) + b_fused
        return acc[:, :num_cls], acc[:, cls_pad:cls_pad + num_box]

    # --- Row-tile selection ---------------------------------------------
    # Per-step VMEM: f32 x tile + the two f32 output tiles are double-buffered
    # by the pipeline; the fused bf16 weight/bias stay resident (1 buffer).
    w_bytes = int(w_fused.size) * w_fused.dtype.itemsize
    def vmem_bytes(t):
        return (2 * t * c * 4            # x tiles (f32, double-buffered)
                + 2 * t * out_pad * 4    # output tiles (f32, double-buffered)
                + w_bytes + out_pad * 4) # resident fused weight + bias

    tn = max(8, min(_round_up(tile_n, 8), _round_up(n, 8)))
    while tn > 8 and vmem_bytes(tn) > vmem_budget_bytes:
        tn = max(8, _round_up(tn // 2, 8))
    # Give the pipeline (and v7x's 2nd TensorCore on the "parallel" axis) at
    # least two row blocks once N is large enough to split.
    if n >= 256:
        tn = min(tn, max(128, _round_up(pl.cdiv(n, 2), 8)))
    grid = (pl.cdiv(n, tn),)

    kernel = functools.partial(_predictor_kernel, cls_pad=cls_pad)
    out_cls, out_box = pl.pallas_call(
        kernel,
        out_shape=(jax.ShapeDtypeStruct((n, cls_pad), jnp.float32),
                   jax.ShapeDtypeStruct((n, box_pad), jnp.float32)),
        grid=grid,
        in_specs=[
            pl.BlockSpec((tn, c), lambda i: (i, 0)),   # f32 x row tiles
            _resident_spec((c, out_pad)),              # fused W (VMEM-resident)
            _resident_spec((1, out_pad)),              # fused bias (resident)
        ],
        out_specs=(pl.BlockSpec((tn, cls_pad), lambda i: (i, 0)),
                   pl.BlockSpec((tn, box_pad), lambda i: (i, 0))),
        compiler_params=pltpu.CompilerParams(
            dimension_semantics=("parallel",),
            vmem_limit_bytes=32 * 2 ** 20),
    )(x2d, w_fused, b_fused)

    # Each head starts at lane 0 of its own lane-dense slab; trimming the
    # padded tail is a lane-aligned (cheap) slice.
    return out_cls[:, :num_cls], out_box[:, :num_box]


if __name__ == "__main__":
    # Deterministic synthetic parameters / inputs (no checkpoint loading).
    in_channels = 32
    num_classes = 8
    n_rois = 300          # exercises 2 row tiles + a ragged last block

    key = jax.random.PRNGKey(0)
    k_x, k_wc, k_bc, k_wb, k_bb, k_xs = jax.random.split(key, 6)

    # RoI-head output comes in as (N, C, 1, 1) in the 4-D case.
    x = jax.random.normal(k_x, (n_rois, in_channels, 1, 1), dtype=jnp.float32)

    bound = 1.0 / (in_channels ** 0.5)   # mimic nn.Linear uniform init range
    w_cls = jax.random.uniform(k_wc, (num_classes, in_channels),
                               minval=-bound, maxval=bound, dtype=jnp.float32)
    b_cls = jax.random.uniform(k_bc, (num_classes,),
                               minval=-bound, maxval=bound, dtype=jnp.float32)
    w_bbox = jax.random.uniform(k_wb, (num_classes * 4, in_channels),
                                minval=-bound, maxval=bound, dtype=jnp.float32)
    b_bbox = jax.random.uniform(k_bb, (num_classes * 4,),
                                minval=-bound, maxval=bound, dtype=jnp.float32)

    # One-time parameter prep (fuse + lane-pad + bf16), hoisted out of hot path.
    params = prepare_params(w_cls, b_cls, w_bbox, b_bbox,
                            compute_dtype=jnp.bfloat16)

    # Pallas path.
    scores, bbox_deltas = fast_rcnn_predictor(x, *params)
    jax.block_until_ready((scores, bbox_deltas))

    # References in plain JAX.
    def refs(xin):
        x2d = xin.reshape(xin.shape[0], -1)
        xb = x2d.astype(jnp.bfloat16)
        wc_b = w_cls.astype(jnp.bfloat16)
        wb_b = w_bbox.astype(jnp.bfloat16)
        s_bf = jnp.dot(xb, wc_b.T, preferred_element_type=jnp.float32) + b_cls
        d_bf = jnp.dot(xb, wb_b.T, preferred_element_type=jnp.float32) + b_bbox
        s_f32 = x2d @ w_cls.T + b_cls
        d_f32 = x2d @ w_bbox.T + b_bbox
        return s_bf, d_bf, s_f32, d_f32

    s_bf, d_bf, s_f32, d_f32 = refs(x)
    assert scores.shape == (n_rois, num_classes)
    assert bbox_deltas.shape == (n_rois, num_classes * 4)
    # (a) tight check vs bf16-input reference (kernel's compute dtype).
    assert jnp.allclose(scores, s_bf, atol=2e-2, rtol=2e-2)
    assert jnp.allclose(bbox_deltas, d_bf, atol=2e-2, rtol=2e-2)
    # (b) loose check vs f32 PyTorch-semantics reference.
    assert jnp.allclose(scores, s_f32, atol=1e-1, rtol=1e-1)
    assert jnp.allclose(bbox_deltas, d_f32, atol=1e-1, rtol=1e-1)

    # Small-N fallback path (plain XLA dot, identical semantics).
    x_small = jax.random.normal(k_xs, (2, in_channels, 1, 1), dtype=jnp.float32)
    s2, d2 = fast_rcnn_predictor(x_small, *params)
    jax.block_until_ready((s2, d2))
    s2_bf, d2_bf, _, _ = refs(x_small)
    assert s2.shape == (2, num_classes) and d2.shape == (2, num_classes * 4)
    assert jnp.allclose(s2, s2_bf, atol=2e-2, rtol=2e-2)
    assert jnp.allclose(d2, d2_bf, atol=2e-2, rtol=2e-2)

    print("KERNEL_OK")
</pallas_src>

<mosaic_0001>
module attributes {stable_mosaic.version = 11 : i64} {
  func.func @_predictor_kernel(%arg0: i32, %arg1: memref<152x32xf32, #tpu.memory_space<vmem>>, %arg2: memref<32x256xbf16, #tpu.memory_space<vmem>>, %arg3: memref<1x256xf32, #tpu.memory_space<vmem>>, %arg4: memref<152x128xf32, #tpu.memory_space<vmem>>, %arg5: memref<152x128xf32, #tpu.memory_space<vmem>>) attributes {dimension_semantics = [#tpu.dimension_semantics<parallel>], iteration_bounds = array<i64: 2>, scalar_prefetch = 0 : i64, scratch_operands = 0 : i64, tpu.core_type = #tpu.core_type<tc>, window_params = [{transform_indices = @transform_0, window_bounds = array<i64: 152, 32>}, {pipeline_mode = #tpu.pipeline_mode<synchronous>, transform_indices = @transform_1, window_bounds = array<i64: 32, 256>}, {pipeline_mode = #tpu.pipeline_mode<synchronous>, transform_indices = @transform_2, window_bounds = array<i64: 1, 256>}, {transform_indices = @transform_3, window_bounds = array<i64: 152, 128>}, {transform_indices = @transform_4, window_bounds = array<i64: 152, 128>}]} {
    %c0 = arith.constant 0 : index
    %c0_0 = arith.constant 0 : index
    %0 = vector.load %arg1[%c0, %c0_0] : memref<152x32xf32, #tpu.memory_space<vmem>>, vector<152x32xf32>
    %1 = arith.truncf %0 : vector<152x32xf32> to vector<152x32xbf16>
    %c0_1 = arith.constant 0 : index
    %c0_2 = arith.constant 0 : index
    %2 = vector.load %arg2[%c0_1, %c0_2] : memref<32x256xbf16, #tpu.memory_space<vmem>>, vector<32x256xbf16>
    %cst = arith.constant dense<0.000000e+00> : vector<152x256xf32>
    %3 = tpu.matmul %1, %2, %cst {dimension_numbers = #tpu.dot_dimension_numbers<[1], [0], [0], [1], [0, 0, 1, 1], [], []>} : vector<152x32xbf16>, vector<32x256xbf16>, vector<152x256xf32> -> vector<152x256xf32>
    %c0_3 = arith.constant 0 : index
    %c0_4 = arith.constant 0 : index
    %4 = vector.load %arg3[%c0_3, %c0_4] : memref<1x256xf32, #tpu.memory_space<vmem>>, vector<1x256xf32>
    %5 = vector.broadcast %4 : vector<1x256xf32> to vector<152x256xf32>
    %6 = arith.addf %3, %5 : vector<152x256xf32>
    %7 = vector.extract_strided_slice %6 {offsets = [0, 0], sizes = [152, 128], strides = [1, 1]} : vector<152x256xf32> to vector<152x128xf32>
    %c0_5 = arith.constant 0 : index
    %c0_6 = arith.constant 0 : index
    %8 = vector.load %arg4[%c0_5, %c0_6] : memref<152x128xf32, #tpu.memory_space<vmem>>, vector<152x128xf32>
    tpu.vector_store %arg4[%c0_5, %c0_6], %7 {strides = array<i32>} : memref<152x128xf32, #tpu.memory_space<vmem>>, vector<152x128xf32>,
    %9 = vector.extract_strided_slice %6 {offsets = [0, 128], sizes = [152, 128], strides = [1, 1]} : vector<152x256xf32> to vector<152x128xf32>
    %c0_7 = arith.constant 0 : index
    %c0_8 = arith.constant 0 : index
    %10 = vector.load %arg5[%c0_7, %c0_8] : memref<152x128xf32, #tpu.memory_space<vmem>>, vector<152x128xf32>
    tpu.vector_store %arg5[%c0_7, %c0_8], %9 {strides = array<i32>} : memref<152x128xf32, #tpu.memory_space<vmem>>, vector<152x128xf32>,
    return
  }
  func.func @transform_0(%arg0: i32) -> (i32, i32) {
    %c0_i32 = arith.constant 0 : i32
    %c0_i32_0 = arith.constant 0 : i32
    return %arg0, %c0_i32 : i32, i32
  }
  func.func @transform_1(%arg0: i32) -> (i32, i32) {
    %c0_i32 = arith.constant 0 : i32
    %c0_i32_0 = arith.constant 0 : i32
    %c0_i32_1 = arith.constant 0 : i32
    return %c0_i32, %c0_i32_0 : i32, i32
  }
  func.func @transform_2(%arg0: i32) -> (i32, i32) {
    %c0_i32 = arith.constant 0 : i32
    %c0_i32_0 = arith.constant 0 : i32
    %c0_i32_1 = arith.constant 0 : i32
    return %c0_i32, %c0_i32_0 : i32, i32
  }
  func.func @transform_3(%arg0: i32) -> (i32, i32) {
    %c0_i32 = arith.constant 0 : i32
    %c0_i32_0 = arith.constant 0 : i32
    return %arg0, %c0_i32 : i32, i32
  }
  func.func @transform_4(%arg0: i32) -> (i32, i32) {
    %c0_i32 = arith.constant 0 : i32
    %c0_i32_0 = arith.constant 0 : i32
    return %arg0, %c0_i32 : i32, i32
  }
}

</mosaic_0001>

<bundles_post_ra>
// kernel: tpu_custom_call.1
= control target key start
LH: loop header
LB: loop body
LE: loop exit
PB: predicated region body
PF: predicated region fallthrough
CT: control target
= control target key end

     0   :  { %10 = vsyncpa [#allocation3], 0  ;;  %s1089_s0 = inlined_call_operand.vmem [shape: f32[300,32], index: 0, kind: input, shape index: {}]   ;;  %s1090_s1 = inlined_call_operand.vmem [shape: bf16[32,256], index: 1, kind: input, shape index: {}]   ;;  %s1091_s2 = inlined_call_operand.vmem [shape: f32[1,256], index: 2, kind: input, shape index: {}]   ;;  %s1092_s3 = inlined_call_operand.hbm [shape: f32[300,128], index: 3, kind: output, shape index: {0}]   ;;  %s1093_s4 = inlined_call_operand.hbm [shape: f32[300,128], index: 4, kind: output, shape index: {1}]  }
   0x1   :  { %12 = vsyncpa [#allocation3 + $0x1], 0 }
   0x2   :  { %13 = vsyncpa [#allocation5], 0 }
   0x3   :  { %15 = vsyncpa [#allocation5 + $0x1], 0  ;;  %s815_s15 = smov 0   ;;  %s817_s16 = smov 0  }
   0x4   :  { %s819_s17 = smov 0   ;;  %s821_s18 = smov 0  }
   0x5 LB: > { %s836_s19 = sadd.s32 4294967295, %s783_s18   ;;  %s606_s20 = sadd.s32 4294967294, %s783_s18   ;;  %s783_s18 = sphi %s821_s18, %s1099_s18   ;;  %s779_s17 = sphi %s819_s17, %s1098_s17   ;;  %s775_s16 = sphi %s817_s16, %s1097_s16   ;;  %s771_s15 = sphi %s815_s15, %s1096_s15  }
   0x6   : > { %s840_s21 = sadd.s32 1, %s783_s18   ;;  %s96_s22 = sadd.s32 1, %s779_s17 }
   0x7   : > { %s93_s23 = ssub.s32 %s783_s18, %s840_s21  ;;  %p106_p0 = scmp.ne.s32.totalorder %s779_s17, %s775_s16 }
   0x8   : > { %p94_p1 = scmp.eq.s32.totalorder %s93_s23, 0  ;;  %p107_p2 = scmp.eq.s32.totalorder %s836_s19, 1 }
   0x9   : > { %p112_p3 = scmp.ne.s32.totalorder %s775_s16, %s771_s15  ;;  %p113_p4 = scmp.eq.s32.totalorder %s606_s20, 1 }
   0xa   : > { %s851_s24 = scalar_select %p94_p1, %s779_s17, %s96_s22  }
   0xb   : > { %p853_p5 = por %p107_p2, %p106_p0  ;;  %p857_p6 = por %p113_p4, %p112_p3 }
   0xc   : > { %p609_p7 = scmp.ge.s32.totalorder %s783_s18, 1  ;;  %p172_p8 = scmp.lt.s32.totalorder %s783_s18, 3 }
   0xe   : > { %p173_p9 = pnand %p609_p7, %p172_p8 }
   0xf   : > { %v683_v0 = vld [vmem:[%s1090_s1 + $0x4] ss:$8 sps:$4 sm:$0xff] (!%p173_p9)   ;;  %s203_s29 = smul.u32 (!%p173_p9), 19, %s836_s19  ;;  %v685_v1 = vld [vmem:[%s1090_s1] ss:$8 sps:$4 sm:$0xff] (!%p173_p9)   ;;  %v785_v2 = vmov (!%p173_p9), 0   ;;  %v247_v34 = vlaneseq (!%p173_p9) }
  0x10   : > { %176 = sbr.rel (%p173_p9) target bundleno = 316 (0x13c), region = 32  ;;  %340 = vmatprep.mubr.bf16.mxu0 (!%p173_p9), %v785_v2  ;;  %390 = vmatprep.mubr.bf16.mxu1 (!%p173_p9), %v785_v2  ;;  %v686_v3 = vld [vmem:[%s1090_s1 + $0x14] ss:$8 sps:$4 sm:$0xff] (!%p173_p9)   ;;  %v688_v4 = vld [vmem:[%s1090_s1 + $0x10] ss:$8 sps:$4 sm:$0xff] (!%p173_p9)   ;;  %vm277_vm0 = vcmask (!%p173_p9), 261120  }
  0x11   : > { %308 = vmatprep.subr.bf16.mxu0 (!%p173_p9), %v683_v0  ;;  %631 = vmatprep.subr.bf16.mxu1 (!%p173_p9), %v683_v0  ;;  %p204_p10 = scmp.lt.s32.totalorder (!%p173_p9), %s203_s29, 37  ;;  %v248_v35 = vshrl.u32 (!%p173_p9), %v247_v34, 7  ;;  %s911_s14 = sand.u32 (!%p173_p9), 1, %s775_s16   ;;  %v245_v37 = vld [vmem:[%s1091_s2] sm:$0x3] (!%p173_p9) }
  0x12   : > { %309 = vmatpush1.bf16.msra.mxu0 (!%p173_p9), %v685_v1  ;;  %633 = vmatpush1.bf16.msra.mxu1 (!%p173_p9), %v685_v1  ;;  %s635_s23 = smul.u32 (!%p173_p9), 152, %s911_s14  ;;  %s478_s11 = scalar_lea.sflag (!%p173_p9), [#allocation3], %s911_s14 }
  0x13   : > { %310 = vmatprep.subr.bf16.mxu0 (!%p173_p9), %v686_v3  ;;  %632 = vmatprep.subr.bf16.mxu1 (!%p173_p9), %v686_v3  ;;  %v249_v36 = vsub.s32 (!%p173_p9), 0, %v248_v35  ;;  %v253_v38 = vsub.s32 (!%p173_p9), 1, %v248_v35 }
  0x14   : > { %s924_s27 = scalar_lea.vmem (!%p173_p9), [#allocation2], %s635_s23  ;;  %s930_s28 = scalar_lea.vmem (!%p173_p9), [#allocation4], %s635_s23 }
  0x15   : > { %v917_v39 = vrot.slane (!%p173_p9), %v245_v37, %v249_v36  ;;  %v919_v40 = vrot.slane (!%p173_p9), %v245_v37, %v253_v38  ;;  %s496_s30 = sshll.u32 (!%p173_p9), %s924_s27, 4  ;;  %s512_s5 = sshll.u32 (!%p173_p9), %s930_s28, 4  ;;  %s1003_s30 = int_to_ptr.vmem [resolvable:$true] %s496_s30  ;;  %s1013_s5 = int_to_ptr.vmem [resolvable:$true] %s512_s5 }
  0x16   : > { %311 = vmatpush1.bf16.msra.mxu0 (!%p173_p9), %v688_v4  ;;  %634 = vmatpush1.bf16.msra.mxu1 (!%p173_p9), %v688_v4  ;;  %s689_s12 = scalar_lea.vmem (!%p173_p9), %s1003_s30, 2432 }
  0x17   : > { %s1101_s29 = smov (!%p204_p10, %s203_s29), 37  ;;  %p690_p11 = scmp.ne.s32.totalorder %s1003_s30, %s689_s12 }
  0x18   : > { %s610_s10 = sshll.u32 %s1101_s29, 3  ;;  %s629_s29 = smul.u32 2432, %s836_s19 }
  0x19   : > { %s879_s13 = scalar_lea.vmem %s1089_s0, %s610_s10  ;;  %p691_p12 = pnand %p690_p11, %p853_p5 }
  0x1a   : > { %v212_v5 = vld [vmem:[%s879_s13] sm:$0xff]  ;;  %v213_v6 = vld [vmem:[%s879_s13 + $0x8] sm:$0xff]  ;;  %v222_v7 = vld [vmem:[%s879_s13 + $0x50] sm:$0xff]  ;;  %s998_s7 = scalar_lea.hbm %s1092_s3, %s629_s29  ;;  %s1011_s10 = scalar_lea.hbm %s1093_s4, %s629_s29 }
  0x1b   : > { %v231_v8 = vpack.c.bf16 %v213_v6, %v212_v5  ;;  %v223_v9 = vld [vmem:[%s879_s13 + $0x58] sm:$0xff]  ;;  %v214_v11 = vld [vmem:[%s879_s13 + $0x10] sm:$0xff]  ;;  %v224_v13 = vld [vmem:[%s879_s13 + $0x60] sm:$0xff]  ;;  %p692_p13 = pneg %p691_p12 }
  0x1c   : > { %v236_v10 = vpack.c.bf16 %v223_v9, %v222_v7  ;;  %v215_v12 = vld [vmem:[%s879_s13 + $0x18] sm:$0xff]  ;;  %v225_v14 = vld [vmem:[%s879_s13 + $0x68] sm:$0xff]  ;;  %v216_v17 = vld [vmem:[%s879_s13 + $0x20] sm:$0xff] }
  0x1d   : > { %615 = vmatmul.mubr.msk.bf16.vlgmr.msra.gmra.mrb[0].mxu0 %vm277_vm0, %v231_v8  ;;  %v232_v15 = vpack.c.bf16 %v215_v12, %v214_v11  ;;  %v237_v16 = vpack.c.bf16 %v225_v14, %v224_v13  ;;  %v217_v18 = vld [vmem:[%s879_s13 + $0x28] sm:$0xff]  ;;  %v226_v19 = vld [vmem:[%s879_s13 + $0x70] sm:$0xff]  ;;  %v227_v20 = vld [vmem:[%s879_s13 + $0x78] sm:$0xff] }
  0x1e   : > { %620 = vmatmul.mubr.msk.bf16.vlgmr.msra.gmra.mrb[0].mxu1 %vm277_vm0, %v236_v10  ;;  %350 = vmatprep.mubr.bf16.mxu0 %v785_v2  ;;  %v233_v21 = vpack.c.bf16 %v217_v18, %v216_v17  ;;  %v238_v22 = vpack.c.bf16 %v227_v20, %v226_v19  ;;  %v218_v23 = vld [vmem:[%s879_s13 + $0x30] sm:$0xff]  ;;  %v219_v24 = vld [vmem:[%s879_s13 + $0x38] sm:$0xff]  ;;  %v228_v25 = vld [vmem:[%s879_s13 + $0x80] sm:$0xff] }
  0x1f   : > { %400 = vmatprep.mubr.bf16.mxu1 %v785_v2  ;;  %v229_v26 = vld [vmem:[%s879_s13 + $0x88] sm:$0xff]  ;;  %v234_v27 = vpack.c.bf16 %v219_v24, %v218_v23  ;;  %v220_v29 = vld [vmem:[%s879_s13 + $0x40] sm:$0xff]  ;;  %v230_v31 = vld [vmem:[%s879_s13 + $0x90] sm:$0xff] }
  0x20   : > { %v239_v28 = vpack.c.bf16 %v229_v26, %v228_v25  ;;  %v221_v30 = vld [vmem:[%s879_s13 + $0x48] sm:$0xff]  ;;  %v240_v33 = vpack.c.bf16 %v230_v31, %v230_v31  ;;  %s786_s13 = smov [#allocation2]  }
  0x21   : > { %v235_v32 = vpack.c.bf16 %v221_v30, %v220_v29  ;;  %s693_s20 = sshll.u32 %s786_s13, 4  ;;  %s694_s20 = int_to_ptr.vmem [resolvable:$false] %s693_s20 }
  0x22   : > { %s695_s22 = scalar_lea.vmem %s694_s20, 4864  ;;  %p696_p0 = scmp.lt.s32.totalorder %s1003_s30, %s694_s20 }
  0x23   : > { %p697_p1 = scmp.lt.s32.totalorder %s695_s22, %s689_s12 }
  0x25   : > { %616 = vmatmul.mubr.msk.bf16.gmra.mrb[4].mxu0 %vm277_vm0, %v232_v15  ;;  %p698_p2 = por %p697_p1, %p696_p0 }
  0x26   : > { %621 = vmatmul.mubr.msk.bf16.gmra.mrb[4].mxu1 %vm277_vm0, %v237_v16  ;;  %360 = vmatprep.mubr.bf16.mxu0 %v785_v2 }
  0x27   : > { %410 = vmatprep.mubr.bf16.mxu1 %v785_v2  ;;  %p699_p3 = pnand %p698_p2, %p692_p13 }
  0x2d   : > { %617 = vmatmul.mubr.msk.bf16.gmra.mrb[8].mxu0 %vm277_vm0, %v233_v21 }
  0x2e   : > { %622 = vmatmul.mubr.msk.bf16.gmra.mrb[8].mxu1 %vm277_vm0, %v238_v22  ;;  %370 = vmatprep.mubr.bf16.mxu0 %v785_v2 }
  0x2f   : > { %420 = vmatprep.mubr.bf16.mxu1 %v785_v2 }
  0x35   : > { %618 = vmatmul.mubr.msk.bf16.gmra.mrb[12].mxu0 %vm277_vm0, %v234_v27 }
  0x36   : > { %623 = vmatmul.mubr.msk.bf16.gmra.mrb[12].mxu1 %vm277_vm0, %v239_v28  ;;  %380 = vmatprep.mubr.bf16.mxu0 %v785_v2 }
  0x37   : > { %430 = vmatprep.mubr.bf16.mxu1 %v785_v2 }
  0x3d   : > { %619 = vmatmul.mubr.msk.bf16.gmra.mrb[16].mxu0 %vm277_vm0, %v235_v32 }
  0x3e   : > { %624 = vmatmul.mubr.msk.bf16.gmra.mrb[16].mxu1 %vm277_vm0, %v240_v33 }
  0xf0   : > { %v342_v41 = vpop.f32.mrb[0].mxu0 }
  0xf1   : > { %v343_v42 = vadd.f32 %v342_v41, %v917_v39  ;;  %v392_v43 = vpop.f32.mrb[0].mxu1  ;;  %v344_v44 = vpop.f32.mrb[1].mxu0 }
  0xf2   : > { %v393_v45 = vadd.f32 %v392_v43, %v917_v39  ;;  %v345_v46 = vadd.f32 %v344_v44, %v919_v40  ;;  %v394_v47 = vpop.f32.mrb[1].mxu1  ;;  %v346_v48 = vpop.f32.mrb[2].mxu0 }
  0xf3   : > { %439 = vst [vmem:[%s924_s27] sm:$0xff] %v343_v42  ;;  %v395_v49 = vadd.f32 %v394_v47, %v919_v40  ;;  %v347_v50 = vadd.f32 %v346_v48, %v917_v39  ;;  %v396_v51 = vpop.f32.mrb[2].mxu1  ;;  %v348_v52 = vpop.f32.mrb[3].mxu0 }
  0xf4   : > { %449 = vst [vmem:[%s924_s27 + $0x50] sm:$0xff] %v393_v45  ;;  %458 = vst [vmem:[%s930_s28] sm:$0xff] %v345_v46  ;;  %v397_v53 = vadd.f32 %v396_v51, %v917_v39  ;;  %v349_v54 = vadd.f32 %v348_v52, %v919_v40  ;;  %v398_v55 = vpop.f32.mrb[3].mxu1 }
  0xf5   : > { %468 = vst [vmem:[%s930_s28 + $0x50] sm:$0xff] %v395_v49  ;;  %440 = vst [vmem:[%s924_s27 + $0x8] sm:$0xff] %v347_v50  ;;  %v399_v56 = vadd.f32 %v398_v55, %v919_v40 }
  0xf6   : > { %450 = vst [vmem:[%s924_s27 + $0x58] sm:$0xff] %v397_v53  ;;  %459 = vst [vmem:[%s930_s28 + $0x8] sm:$0xff] %v349_v54 }
  0xf7   : > { %469 = vst [vmem:[%s930_s28 + $0x58] sm:$0xff] %v399_v56 }
  0xf8   : > { %v352_v57 = vpop.f32.mrb[4].mxu0 }
  0xf9   : > { %v353_v58 = vadd.f32 %v352_v57, %v917_v39  ;;  %v402_v59 = vpop.f32.mrb[4].mxu1  ;;  %v354_v60 = vpop.f32.mrb[5].mxu0 }
  0xfa   : > { %v403_v61 = vadd.f32 %v402_v59, %v917_v39  ;;  %v355_v62 = vadd.f32 %v354_v60, %v919_v40  ;;  %v404_v63 = vpop.f32.mrb[5].mxu1  ;;  %v356_v0 = vpop.f32.mrb[6].mxu0 }
  0xfb   : > { %441 = vst [vmem:[%s924_s27 + $0x10] sm:$0xff] %v353_v58  ;;  %v405_v1 = vadd.f32 %v404_v63, %v919_v40  ;;  %v357_v2 = vadd.f32 %v356_v0, %v917_v39  ;;  %v406_v3 = vpop.f32.mrb[6].mxu1  ;;  %v358_v4 = vpop.f32.mrb[7].mxu0 }
  0xfc   : > { %451 = vst [vmem:[%s924_s27 + $0x60] sm:$0xff] %v403_v61  ;;  %460 = vst [vmem:[%s930_s28 + $0x10] sm:$0xff] %v355_v62  ;;  %v407_v5 = vadd.f32 %v406_v3, %v917_v39  ;;  %v359_v6 = vadd.f32 %v358_v4, %v919_v40  ;;  %v408_v7 = vpop.f32.mrb[7].mxu1 }
  0xfd   : > { %470 = vst [vmem:[%s930_s28 + $0x60] sm:$0xff] %v405_v1  ;;  %442 = vst [vmem:[%s924_s27 + $0x18] sm:$0xff] %v357_v2  ;;  %v409_v8 = vadd.f32 %v408_v7, %v919_v40 }
  0xfe   : > { %452 = vst [vmem:[%s924_s27 + $0x68] sm:$0xff] %v407_v5  ;;  %461 = vst [vmem:[%s930_s28 + $0x18] sm:$0xff] %v359_v6 }
  0xff   : > { %471 = vst [vmem:[%s930_s28 + $0x68] sm:$0xff] %v409_v8 }
 0x100   : > { %v362_v9 = vpop.f32.mrb[8].mxu0 }
 0x101   : > { %v363_v10 = vadd.f32 %v362_v9, %v917_v39  ;;  %v412_v11 = vpop.f32.mrb[8].mxu1  ;;  %v364_v12 = vpop.f32.mrb[9].mxu0 }
 0x102   : > { %v413_v13 = vadd.f32 %v412_v11, %v917_v39  ;;  %v365_v14 = vadd.f32 %v364_v12, %v919_v40  ;;  %v414_v15 = vpop.f32.mrb[9].mxu1  ;;  %v366_v16 = vpop.f32.mrb[10].mxu0 }
 0x103   : > { %443 = vst [vmem:[%s924_s27 + $0x20] sm:$0xff] %v363_v10  ;;  %v415_v17 = vadd.f32 %v414_v15, %v919_v40  ;;  %v367_v18 = vadd.f32 %v366_v16, %v917_v39  ;;  %v416_v19 = vpop.f32.mrb[10].mxu1  ;;  %v368_v20 = vpop.f32.mrb[11].mxu0 }
 0x104   : > { %453 = vst [vmem:[%s924_s27 + $0x70] sm:$0xff] %v413_v13  ;;  %462 = vst [vmem:[%s930_s28 + $0x20] sm:$0xff] %v365_v14  ;;  %v417_v21 = vadd.f32 %v416_v19, %v917_v39  ;;  %v369_v22 = vadd.f32 %v368_v20, %v919_v40  ;;  %v418_v23 = vpop.f32.mrb[11].mxu1 }
 0x105   : > { %472 = vst [vmem:[%s930_s28 + $0x70] sm:$0xff] %v415_v17  ;;  %444 = vst [vmem:[%s924_s27 + $0x28] sm:$0xff] %v367_v18  ;;  %v419_v24 = vadd.f32 %v418_v23, %v919_v40 }
 0x106   : > { %454 = vst [vmem:[%s924_s27 + $0x78] sm:$0xff] %v417_v21  ;;  %463 = vst [vmem:[%s930_s28 + $0x28] sm:$0xff] %v369_v22 }
 0x107   : > { %473 = vst [vmem:[%s930_s28 + $0x78] sm:$0xff] %v419_v24 }
 0x108   : > { %v372_v25 = vpop.f32.mrb[12].mxu0 }
 0x109   : > { %v373_v26 = vadd.f32 %v372_v25, %v917_v39  ;;  %v422_v27 = vpop.f32.mrb[12].mxu1  ;;  %v374_v28 = vpop.f32.mrb[13].mxu0 }
 0x10a   : > { %v423_v29 = vadd.f32 %v422_v27, %v917_v39  ;;  %v375_v30 = vadd.f32 %v374_v28, %v919_v40  ;;  %v424_v31 = vpop.f32.mrb[13].mxu1  ;;  %v376_v32 = vpop.f32.mrb[14].mxu0 }
 0x10b   : > { %445 = vst [vmem:[%s924_s27 + $0x30] sm:$0xff] %v373_v26  ;;  %v425_v33 = vadd.f32 %v424_v31, %v919_v40  ;;  %v377_v34 = vadd.f32 %v376_v32, %v917_v39  ;;  %v426_v35 = vpop.f32.mrb[14].mxu1  ;;  %v378_v36 = vpop.f32.mrb[15].mxu0 }
 0x10c   : > { %455 = vst [vmem:[%s924_s27 + $0x80] sm:$0xff] %v423_v29  ;;  %464 = vst [vmem:[%s930_s28 + $0x30] sm:$0xff] %v375_v30  ;;  %v427_v37 = vadd.f32 %v426_v35, %v917_v39  ;;  %v379_v38 = vadd.f32 %v378_v36, %v919_v40  ;;  %v428_v41 = vpop.f32.mrb[15].mxu1 }
 0x10d   : > { %474 = vst [vmem:[%s930_s28 + $0x80] sm:$0xff] %v425_v33  ;;  %446 = vst [vmem:[%s924_s27 + $0x38] sm:$0xff] %v377_v34  ;;  %v429_v42 = vadd.f32 %v428_v41, %v919_v40 }
 0x10e   : > { %456 = vst [vmem:[%s924_s27 + $0x88] sm:$0xff] %v427_v37  ;;  %465 = vst [vmem:[%s930_s28 + $0x38] sm:$0xff] %v379_v38 }
 0x10f   : > { %475 = vst [vmem:[%s930_s28 + $0x88] sm:$0xff] %v429_v42 }
 0x110   : > { %v382_v43 = vpop.f32.mrb[16].mxu0 }
 0x111   : > { %v383_v44 = vadd.f32 %v382_v43, %v917_v39  ;;  %v432_v45 = vpop.f32.mrb[16].mxu1  ;;  %v384_v46 = vpop.f32.mrb[17].mxu0 }
 0x112   : > { %v433_v47 = vadd.f32 %v432_v45, %v917_v39  ;;  %v385_v48 = vadd.f32 %v384_v46, %v919_v40  ;;  %v434_v49 = vpop.f32.mrb[17].mxu1  ;;  %v386_v50 = vpop.f32.mrb[18].mxu0 }
 0x113   : > { %447 = vst [vmem:[%s924_s27 + $0x40] sm:$0xff] %v383_v44  ;;  %v435_v51 = vadd.f32 %v434_v49, %v919_v40  ;;  %v387_v52 = vadd.f32 %v386_v50, %v917_v39  ;;  %v436_v53 = vpop.f32.mrb[18].mxu1  ;;  %v388_v54 = vpop.f32.mrb[19].mxu0 }
 0x114   : > { %457 = vst [vmem:[%s924_s27 + $0x90] sm:$0xff] %v433_v47  ;;  %466 = vst [vmem:[%s930_s28 + $0x40] sm:$0xff] %v385_v48  ;;  %v389_v55 = vadd.f32 %v388_v54, %v919_v40  ;;  %v437_v56 = vpop.f32.mrb[19].mxu1 }
 0x115   : > { %476 = vst [vmem:[%s930_s28 + $0x90] sm:$0xff] %v435_v51  ;;  %448 = vst [vmem:[%s924_s27 + $0x48] sm:$0xff] %v387_v52 }
 0x116   : > { %467 = vst [vmem:[%s930_s28 + $0x48] sm:$0xff] %v389_v55 }
 0x117   : > { %702 = shalt.err (!%p699_p3)
}
 0x118   : > { %s703_s23 = scalar_lea.hbm %s998_s7, 2432  ;;  %s707_s29 = scalar_lea.hbm %s1092_s3, 4864 }
 0x119   : > { %p704_p4 = scmp.ne.s32.totalorder %s998_s7, %s703_s23  ;;  %p708_p9 = scmp.lt.u32.totalorder %s998_s7, %s1092_s3 }
 0x11a   : > { %p709_p10 = scmp.lt.u32.totalorder %s707_s29, %s703_s23  ;;  %p711_p12 = scmp.lt.u32.totalorder %s703_s23, %s998_s7 }
 0x11b   : > { %p705_p7 = pnand %p704_p4, %p853_p5 }
 0x11c   : > { %p710_p11 = por %p709_p10, %p708_p9 }
 0x11d   : > { %p706_p8 = pneg %p705_p7 }
 0x11e   : > { %p712_p13 = por %p711_p12, %p710_p11 }
 0x120   : > { %p713_p0 = pnand %p712_p13, %p706_p8 }
 0x122   : > { %716 = shalt.err (!%p713_p0)
}
 0x123   : > { %s787_s8 = smov 128   ;;  %s788_s9 = smov 8  }
 0x124   : > { %636 = dma.vmem_to_hbm [thread:$0]  (%p853_p5), %s1003_s30, 2432, %s998_s7, %s478_s11, %s787_s8, %s787_s8, %s788_s9  }
 0x125   : > { %s483_s12 = scalar_lea.sflag [#allocation5], %s911_s14  ;;  %s717_s13 = scalar_lea.vmem %s1013_s5, 2432 }
 0x126   : > { %p718_p1 = scmp.ne.s32.totalorder %s1013_s5, %s717_s13  ;;  %s789_s20 = smov [#allocation4]  }
 0x127   : > { %s721_s22 = sshll.u32 %s789_s20, 4  ;;  %s722_s22 = int_to_ptr.vmem [resolvable:$false] %s721_s22 }
 0x128   : > { %p719_p2 = pnand %p718_p1, %p853_p5  ;;  %s723_s23 = scalar_lea.vmem %s722_s22, 4864 }
 0x129   : > { %p724_p4 = scmp.lt.s32.totalorder %s1013_s5, %s722_s22  ;;  %p725_p7 = scmp.lt.s32.totalorder %s723_s23, %s717_s13 }
 0x12a   : > { %p720_p3 = pneg %p719_p2 }
 0x12b   : > { %p726_p8 = por %p725_p7, %p724_p4 }
 0x12d   : > { %p727_p9 = pnand %p726_p8, %p720_p3 }
 0x12f   : > { %730 = shalt.err (!%p727_p9)
}
 0x130   : > { %s731_s30 = scalar_lea.hbm %s1011_s10, 2432  ;;  %s735_s27 = scalar_lea.hbm %s1093_s4, 4864 }
 0x131   : > { %p732_p10 = scmp.ne.s32.totalorder %s1011_s10, %s731_s30  ;;  %p736_p13 = scmp.lt.u32.totalorder %s1011_s10, %s1093_s4 }
 0x132   : > { %p737_p0 = scmp.lt.u32.totalorder %s735_s27, %s731_s30  ;;  %p739_p2 = scmp.lt.u32.totalorder %s731_s30, %s1011_s10 }
 0x133   : > { %p733_p11 = pnand %p732_p10, %p853_p5 }
 0x134   : > { %p738_p1 = por %p737_p0, %p736_p13 }
 0x135   : > { %p734_p12 = pneg %p733_p11 }
 0x136   : > { %p740_p3 = por %p739_p2, %p738_p1 }
 0x138   : > { %p741_p4 = pnand %p740_p3, %p734_p12 }
 0x13a   : > { %744 = shalt.err (!%p741_p4)
}
 0x13b   : > { %637 = dma.vmem_to_hbm [thread:$0]  (%p853_p5), %s1013_s5, 2432, %s1011_s10, %s483_s12, %s787_s8, %s787_s8, %s788_s9  }
 0x13c PF: > { %p647_p7 = scmp.ge.s32.totalorder %s783_s18, 2  ;;  %s527_s6 = sand.u32 1, %s771_s15  }
 0x13d   : > { %s528_s19 = scalar_lea.sflag [#allocation3], %s527_s6 }
 0x13e   : > { %p641_p8 = pnand %p647_p7, %p857_p6 }
 0x140   : > { %762 = dma.done.wait (!%p641_p8), %s528_s19, 2432  }
 0x141   : > { %764 = vsyncadd (!%p641_p8), %s528_s19, 4294964864  ;;  %s537_s25 = scalar_lea.sflag [#allocation5], %s527_s6 }
 0x142   : > { %766 = dma.done.wait (!%p641_p8), %s537_s25, 2432  }
 0x143   : > { %768 = vsyncadd (!%p641_p8), %s537_s25, 4294964864  ;;  %p18_p5 = scmp.ge.s32.totalorder %s840_s21, 4   ;;  %s1096_s15 = smov %s775_s16 }
 0x144   : > { %s1097_s16 = smov %s779_s17  ;;  %s1098_s17 = smov %s851_s24 }
 0x145   : > { %s1099_s18 = smov %s840_s21  ;;  %20 = sbr.rel (!%p18_p5) target bundleno = 5 (0x5), region = 84 }
 0x14c   :  { %542 = vsyncpa [#allocation3], 1 }
 0x14d   :  { %544 = vsyncpa [#allocation3 + $0x1], 1 }
 0x14e   :  { %545 = vsyncpa [#allocation5], 1 }
 0x14f   :  { %547 = vsyncpa [#allocation5 + $0x1], 1 }

</bundles_post_ra>
